<compile_context>
chip_gen: v7x
topology: tpu7x:2x2x1
jax: 0.10.0
libtpu: 0.0.40
codegen_flags: <defaults>
</compile_context>

<pallas_src>
import functools

import jax
import jax.numpy as jnp
from jax.experimental import pallas as pl
from jax.experimental.pallas import tpu as pltpu


def _cdiv(a, b):
    return -(-a // b)


def _round_up(a, m):
    return ((a + m - 1) // m) * m


def _round_down(a, m):
    return (a // m) * m


def _sentinel_for(dtype):
    if jnp.issubdtype(dtype, jnp.floating):
        return jnp.array(jnp.finfo(dtype).max, dtype=dtype)
    if jnp.issubdtype(dtype, jnp.integer):
        return jnp.array(jnp.iinfo(dtype).max, dtype=dtype)
    raise TypeError(f"MinPool1D kernel: unsupported dtype {dtype}")


def _vmem_budget():
    """Generation-aware (v5e/v6e/v7x) per-buffer DMA budget and scoped-VMEM limit."""
    try:
        cap = int(pltpu.get_tpu_info().vmem_capacity_bytes)
        if cap <= 0:
            raise ValueError
    except Exception:
        cap = 64 * 1024 * 1024  # conservative (v7x-sized) fallback
    # x is double-buffered by the pipeline: 2 * budget + output must fit the limit.
    budget = max(2 * 1024 * 1024, min(cap // 8, 16 * 1024 * 1024))
    limit = int(min(cap * 3 // 4, 64 * 1024 * 1024))
    return budget, limit


def _block_meta(row_lens, n_rows, tb, tr, red_full, nb):
    """Per row-block: number of valid reduction tiles and minimum valid length."""
    pad = nb * tb - n_rows
    lmax = jnp.pad(row_lens, (0, pad), constant_values=0).reshape(nb, tb)
    lmin = jnp.pad(row_lens, (0, pad), constant_values=red_full).reshape(nb, tb)
    ntiles = (jnp.max(lmax, axis=1) + tr - 1) // tr
    minlen = jnp.min(lmin, axis=1)
    return ntiles.astype(jnp.int32), minlen.astype(jnp.int32)


def _min_rows_kernel(nt_ref, ml_ref, x_ref, len_ref, o_ref, *, tile):
    """Running min over lanes for one (rows-block, reduction-tile) grid cell.

    nt_ref:  SMEM (nb,) int32 — valid reduction tiles per rows-block
    ml_ref:  SMEM (nb,) int32 — minimum valid length per rows-block
    x_ref:   VMEM (TB, TR)
    len_ref: VMEM (TB, 1) int32 per-row valid lengths
    o_ref:   VMEM (TB, 1) running min (resident across the reduction axis)
    """
    b = pl.program_id(0)
    r = pl.program_id(1)
    sentinel = _sentinel_for(o_ref.dtype)

    @pl.when(r == 0)
    def _init():
        o_ref[...] = jnp.full_like(o_ref, sentinel)

    offset = r * tile
    active = r < nt_ref[b]                       # skip fully padded tiles
    fully_valid = (offset + tile) <= ml_ref[b]   # tile valid for every row

    @pl.when(jnp.logical_and(active, fully_valid))
    def _fast():                                 # unmasked fast path (no iota/select)
        o_ref[...] = jnp.minimum(o_ref[...],
                                 jnp.min(x_ref[...], axis=1, keepdims=True))

    @pl.when(jnp.logical_and(active, jnp.logical_not(fully_valid)))
    def _masked():                               # boundary / ragged tile
        x = x_ref[...]
        pos = offset + jax.lax.broadcasted_iota(jnp.int32, (1, x.shape[1]), 1)
        masked = jnp.where(pos < len_ref[...], x, sentinel)
        o_ref[...] = jnp.minimum(o_ref[...],
                                 jnp.min(masked, axis=1, keepdims=True))


def _min_sublane_kernel(nt_ref, ml_ref, x_ref, len_ref, o_ref, *, tile):
    """Running min over sublanes (dim_to_reduce == 1).

    x_ref: VMEM (TB, TR, C); len_ref: VMEM (TB, 1) int32; o_ref: VMEM (TB, C).
    """
    b = pl.program_id(0)
    r = pl.program_id(1)
    sentinel = _sentinel_for(o_ref.dtype)

    @pl.when(r == 0)
    def _init():
        o_ref[...] = jnp.full_like(o_ref, sentinel)

    offset = r * tile
    active = r < nt_ref[b]
    fully_valid = (offset + tile) <= ml_ref[b]

    @pl.when(jnp.logical_and(active, fully_valid))
    def _fast():
        o_ref[...] = jnp.minimum(o_ref[...], jnp.min(x_ref[...], axis=1))

    @pl.when(jnp.logical_and(active, jnp.logical_not(fully_valid)))
    def _masked():
        x = x_ref[...]
        lens = len_ref[...].reshape(x.shape[0], 1, 1)
        pos = offset + jax.lax.broadcasted_iota(jnp.int32, (1, x.shape[1], 1), 1)
        masked = jnp.where(pos < lens, x, sentinel)
        o_ref[...] = jnp.minimum(o_ref[...], jnp.min(masked, axis=1))


def minpool1d(x: jax.Array, lengths, dim_to_reduce: int = 2,
              *, block_b: int | None = None, block_r: int | None = None) -> jax.Array:
    """Equivalent of MinPool1D(dim_to_reduce).forward(x, lengths) (min values).

    x:       (B, D1, D2) array
    lengths: (B,) ints, lengths[b] <= x.shape[dim_to_reduce]
    returns: (B, D1) if dim_to_reduce == 2 else (B, D2)

    TODO(synk): PyTorch errors on lengths[b] == 0 (empty torch.min); here a
    zero-length row silently yields the dtype-max sentinel instead.
    """
    if dim_to_reduce not in (1, 2):
        raise ValueError("dim_to_reduce should be either 1 or 2")
    B, D1, D2 = x.shape
    dtype = x.dtype
    if not (jnp.issubdtype(dtype, jnp.floating) or jnp.issubdtype(dtype, jnp.integer)):
        raise TypeError(f"minpool1d: unsupported dtype {dtype}")
    itemsize = dtype.itemsize
    pack = max(8, 32 // itemsize)      # sublane pack: 8 f32 / 16 bf16 / 32 int8
    budget, vmem_limit = _vmem_budget()

    red_full = D2 if dim_to_reduce == 2 else D1
    lens = jnp.clip(jnp.asarray(lengths, dtype=jnp.int32).reshape(B), 0, red_full)
    cparams = pltpu.CompilerParams(
        dimension_semantics=("parallel", "arbitrary"),
        vmem_limit_bytes=vmem_limit,
    )

    if dim_to_reduce == 2:
        # Flatten to (B*D1, D2): sublane-dense rows, contiguous multi-MiB DMAs,
        # per-row lane reduction. Result (B*D1, 1) reshaped back to (B, D1).
        R, L = B * D1, D2
        x2 = x.reshape(R, L)
        row_lens = jnp.broadcast_to(lens[:, None], (B, D1)).reshape(R)

        # Reduction tile: keep the contiguous axis whole unless it alone busts
        # the per-buffer budget; otherwise large multiples of 128 lanes.
        if block_r is not None:
            TR = min(int(block_r), L)
            if TR < L:
                TR = max(128, _round_down(TR, 128))
        elif pack * L * itemsize <= budget:
            TR = L
        else:
            TR = max(128, _round_down(budget // (pack * itemsize), 128))
            TR = min(TR, L)

        # Row block: as many packed rows as fit the budget, but keep >= 2 blocks
        # on the parallel axis so both v7x TensorCores get work.
        if R <= pack:
            TB = R
        elif block_b is not None:
            TB = max(pack, _round_up(min(int(block_b), R), pack))
        else:
            TB = _round_down(budget // (TR * itemsize), pack)
            TB = max(pack, min(TB, _round_up(R, pack)))
            if _cdiv(R, TB) < 2:
                TB = max(pack, _round_up(_cdiv(R, 2), pack))

        nb, nr = _cdiv(R, TB), _cdiv(L, TR)
        ntiles, minlen = _block_meta(row_lens, R, TB, TR, L, nb)

        def x_map(b, r, nt, ml):
            last = jnp.maximum(nt[b] - 1, 0)
            return (b, jnp.minimum(r, last))   # clamp => padded tiles never re-DMA'd

        grid_spec = pltpu.PrefetchScalarGridSpec(
            num_scalar_prefetch=2,
            grid=(nb, nr),
            in_specs=[pl.BlockSpec((TB, TR), x_map),
                      pl.BlockSpec((TB, 1), lambda b, r, nt, ml: (b, 0))],
            out_specs=pl.BlockSpec((TB, 1), lambda b, r, nt, ml: (b, 0)),
        )
        out = pl.pallas_call(
            functools.partial(_min_rows_kernel, tile=TR),
            out_shape=jax.ShapeDtypeStruct((R, 1), dtype),
            grid_spec=grid_spec,
            compiler_params=cparams,
        )(ntiles, minlen, x2, row_lens.reshape(R, 1))
        return out.reshape(B, D1)

    # ----- dim_to_reduce == 1: reduce over sublanes, keep the lane axis whole -----
    C = D2
    if block_r is not None:
        TR = min(int(block_r), red_full)
        if TR < red_full:
            TR = max(pack, _round_down(TR, pack))   # dtype-aware sublane alignment
    else:
        TR = red_full

    if block_b is not None:
        TB = min(int(block_b), B)
        if TB != B:
            TB = max(8, _round_down(TB, 8))          # (TB, C) out block: 8-aligned TB
            if TB > B:
                TB = B
    else:
        per_batch = _round_up(TR, pack) * C * itemsize
        TB = budget // max(1, per_batch)
        if TB >= B:
            TB = B
        elif TB >= 8:
            TB = _round_down(TB, 8)
        else:
            # A single batch row is huge: tile the reduction axis instead.
            TB = B if B < 8 else 8
            TR = _round_down(budget // max(1, TB * C * itemsize), pack)
            TR = max(pack, min(TR, red_full))
        if TB == B and B >= 16:
            TB = max(8, _round_up(_cdiv(B, 2), 8))   # >= 2 parallel blocks (v7x)

    nb, nr = _cdiv(B, TB), _cdiv(red_full, TR)
    ntiles, minlen = _block_meta(lens, B, TB, TR, red_full, nb)

    def x_map(b, r, nt, ml):
        last = jnp.maximum(nt[b] - 1, 0)
        return (b, jnp.minimum(r, last), 0)

    grid_spec = pltpu.PrefetchScalarGridSpec(
        num_scalar_prefetch=2,
        grid=(nb, nr),
        in_specs=[pl.BlockSpec((TB, TR, C), x_map),
                  pl.BlockSpec((TB, 1), lambda b, r, nt, ml: (b, 0))],
        out_specs=pl.BlockSpec((TB, C), lambda b, r, nt, ml: (b, 0)),
    )
    return pl.pallas_call(
        functools.partial(_min_sublane_kernel, tile=TR),
        out_shape=jax.ShapeDtypeStruct((B, C), dtype),
        grid_spec=grid_spec,
        compiler_params=cparams,
    )(ntiles, minlen, x, lens.reshape(B, 1))


def _reference(x, lengths, dim_to_reduce=2):
    """Pure-JAX reference mirroring _op_over_padded(op=torch.min)."""
    outs = []
    for b, le in enumerate(list(lengths)):
        le = int(le)
        if dim_to_reduce == 1:
            outs.append(jnp.min(x[b, :le, :], axis=0))
        else:
            outs.append(jnp.min(x[b, :, :le], axis=1))
    return jnp.stack(outs, axis=0)


if __name__ == "__main__":
    key = jax.random.PRNGKey(0)

    # 1) module default dim_to_reduce=2, small shape
    B, D1, D2 = 2, 4, 16
    x = jax.random.normal(key, (B, D1, D2), dtype=jnp.float32)
    lengths2 = jnp.array([16, 9], dtype=jnp.int32)
    out2 = jax.block_until_ready(minpool1d(x, lengths2, dim_to_reduce=2))
    ref2 = _reference(x, [16, 9], dim_to_reduce=2)
    assert out2.shape == (B, D1), out2.shape
    assert jnp.allclose(out2, ref2), (out2, ref2)

    # 2) dim_to_reduce = 1 (sublane reduction, no wrapper transpose)
    lengths1 = jnp.array([4, 3], dtype=jnp.int32)
    out1 = jax.block_until_ready(minpool1d(x, lengths1, dim_to_reduce=1))
    ref1 = _reference(x, [4, 3], dim_to_reduce=1)
    assert out1.shape == (B, D2), out1.shape
    assert jnp.allclose(out1, ref1), (out1, ref1)

    # 3) dim=2 with explicit tiles: multiple row blocks, multiple reduction tiles,
    #    fully padded tiles skipped (clamped index map), fast path + boundary mask.
    k3 = jax.random.PRNGKey(0)
    B3, D13, L3 = 6, 4, 512
    x3 = jax.random.normal(k3, (B3, D13, L3), dtype=jnp.float32)
    lens3 = [500, 130, 7, 512, 257, 65]
    out3 = jax.block_until_ready(
        minpool1d(x3, jnp.array(lens3, jnp.int32), dim_to_reduce=2,
                  block_b=8, block_r=128))
    ref3 = _reference(x3, lens3, dim_to_reduce=2)
    assert out3.shape == (B3, D13), out3.shape
    assert jnp.allclose(out3, ref3), (out3, ref3)

    # 4) dim=1 with batch tiling and a partial final reduction tile
    k4 = jax.random.PRNGKey(0)
    B4, D14, D24 = 10, 12, 128
    x4 = jax.random.normal(k4, (B4, D14, D24), dtype=jnp.float32)
    lens4 = [12, 3, 8, 1, 12, 7, 5, 9, 2, 11]
    out4 = jax.block_until_ready(
        minpool1d(x4, jnp.array(lens4, jnp.int32), dim_to_reduce=1,
                  block_b=8, block_r=8))
    ref4 = _reference(x4, lens4, dim_to_reduce=1)
    assert out4.shape == (B4, D24), out4.shape
    assert jnp.allclose(out4, ref4), (out4, ref4)

    # 5) default (auto) tiling path with the >=2-parallel-block adjustment
    k5 = jax.random.PRNGKey(0)
    B5, D15, L5 = 4, 8, 256
    x5 = jax.random.normal(k5, (B5, D15, L5), dtype=jnp.float32)
    lens5 = [256, 100, 1, 200]
    out5 = jax.block_until_ready(
        minpool1d(x5, jnp.array(lens5, jnp.int32), dim_to_reduce=2))
    ref5 = _reference(x5, lens5, dim_to_reduce=2)
    assert out5.shape == (B5, D15), out5.shape
    assert jnp.allclose(out5, ref5), (out5, ref5)

    # 6) bf16 (dtype-aware sublane packing)
    x6 = x.astype(jnp.bfloat16)
    out6 = jax.block_until_ready(minpool1d(x6, lengths2, dim_to_reduce=2))
    ref6 = _reference(x6, [16, 9], dim_to_reduce=2)
    assert jnp.allclose(out6.astype(jnp.float32), ref6.astype(jnp.float32))

    print("KERNEL_OK")
</pallas_src>

<mosaic_0001>
module attributes {stable_mosaic.version = 11 : i64} {
  func.func @_min_rows_kernel(%arg0: i32, %arg1: i32, %arg2: memref<1xi32, #tpu.memory_space<smem>>, %arg3: memref<1xi32, #tpu.memory_space<smem>>, %arg4: memref<8x16xf32, #tpu.memory_space<vmem>>, %arg5: memref<8x1xi32, #tpu.memory_space<vmem>>, %arg6: memref<8x1xf32, #tpu.memory_space<vmem>>) attributes {dimension_semantics = [#tpu.dimension_semantics<parallel>, #tpu.dimension_semantics<arbitrary>], iteration_bounds = array<i64: 1, 1>, scalar_prefetch = 2 : i64, scratch_operands = 0 : i64, tpu.core_type = #tpu.core_type<tc>, window_params = [{transform_indices = @transform_0, window_bounds = array<i64: 8, 16>}, {transform_indices = @transform_1, window_bounds = array<i64: 8, 1>}, {transform_indices = @transform_2, window_bounds = array<i64: 8, 1>}]} {
    %c0_i32 = arith.constant 0 : i32
    %0 = arith.cmpi eq, %arg1, %c0_i32 : i32
    %1 = arith.extui %0 : i1 to i32
    %cst = arith.constant 3.40282347E+38 : f32
    %c0_i32_0 = arith.constant 0 : i32
    %2 = arith.cmpi ne, %1, %c0_i32_0 : i32
    scf.if %2 {
      %18 = vector.broadcast %cst : f32 to vector<8x1xf32>
      %c0 = arith.constant 0 : index
      %c0_5 = arith.constant 0 : index
      %19 = vector.load %arg6[%c0, %c0_5] : memref<8x1xf32, #tpu.memory_space<vmem>>, vector<8x1xf32>
      tpu.vector_store %arg6[%c0, %c0_5], %18 {strides = array<i32>} : memref<8x1xf32, #tpu.memory_space<vmem>>, vector<8x1xf32>,
    } else {
    }
    %c16_i32 = arith.constant 16 : i32
    %3 = arith.muli %arg1, %c16_i32 : i32
    %4 = arith.index_cast %arg0 : i32 to index
    %5 = memref.load %arg2[%4] : memref<1xi32, #tpu.memory_space<smem>>
    %6 = arith.cmpi slt, %arg1, %5 : i32
    %c16_i32_1 = arith.constant 16 : i32
    %7 = arith.addi %3, %c16_i32_1 : i32
    %8 = arith.index_cast %arg0 : i32 to index
    %9 = memref.load %arg3[%8] : memref<1xi32, #tpu.memory_space<smem>>
    %10 = arith.cmpi sle, %7, %9 : i32
    %11 = arith.andi %6, %10 : i1
    %12 = arith.extui %11 : i1 to i32
    %c0_i32_2 = arith.constant 0 : i32
    %13 = arith.cmpi ne, %12, %c0_i32_2 : i32
    scf.if %13 {
      %c0 = arith.constant 0 : index
      %c0_5 = arith.constant 0 : index
      %18 = vector.load %arg6[%c0, %c0_5] : memref<8x1xf32, #tpu.memory_space<vmem>>, vector<8x1xf32>
      %c0_6 = arith.constant 0 : index
      %c0_7 = arith.constant 0 : index
      %19 = vector.load %arg4[%c0_6, %c0_7] : memref<8x16xf32, #tpu.memory_space<vmem>>, vector<8x16xf32>
      %cst_8 = arith.constant dense<0x7F800000> : vector<8xf32>
      %20 = vector.multi_reduction <minimumf>, %19, %cst_8 [1] : vector<8x16xf32> to vector<8xf32>
      %21 = vector.shape_cast %20 : vector<8xf32> to vector<8x1xf32>
      %22 = arith.minimumf %18, %21 : vector<8x1xf32>
      %c0_9 = arith.constant 0 : index
      %c0_10 = arith.constant 0 : index
      %23 = vector.load %arg6[%c0_9, %c0_10] : memref<8x1xf32, #tpu.memory_space<vmem>>, vector<8x1xf32>
      tpu.vector_store %arg6[%c0_9, %c0_10], %22 {strides = array<i32>} : memref<8x1xf32, #tpu.memory_space<vmem>>, vector<8x1xf32>,
    } else {
    }
    %true = arith.constant true
    %14 = arith.xori %10, %true : i1
    %15 = arith.andi %6, %14 : i1
    %16 = arith.extui %15 : i1 to i32
    %cst_3 = arith.constant 3.40282347E+38 : f32
    %c0_i32_4 = arith.constant 0 : i32
    %17 = arith.cmpi ne, %16, %c0_i32_4 : i32
    scf.if %17 {
      %c0 = arith.constant 0 : index
      %c0_5 = arith.constant 0 : index
      %18 = vector.load %arg4[%c0, %c0_5] : memref<8x16xf32, #tpu.memory_space<vmem>>, vector<8x16xf32>
      %19 = tpu.iota {dimensions = array<i32: 1>} : vector<1x16xi32>
      %20 = vector.broadcast %3 : i32 to vector<1x16xi32>
      %21 = arith.addi %20, %19 : vector<1x16xi32>
      %c0_6 = arith.constant 0 : index
      %c0_7 = arith.constant 0 : index
      %22 = vector.load %arg5[%c0_6, %c0_7] : memref<8x1xi32, #tpu.memory_space<vmem>>, vector<8x1xi32>
      %23 = vector.broadcast %21 : vector<1x16xi32> to vector<8x16xi32>
      %24 = vector.broadcast %22 : vector<8x1xi32> to vector<8x16xi32>
      %25 = arith.cmpi slt, %23, %24 : vector<8x16xi32>
      %26 = vector.broadcast %cst_3 : f32 to vector<8x16xf32>
      %27 = arith.select %25, %18, %26 : vector<8x16xi1>, vector<8x16xf32>
      %c0_8 = arith.constant 0 : index
      %c0_9 = arith.constant 0 : index
      %28 = vector.load %arg6[%c0_8, %c0_9] : memref<8x1xf32, #tpu.memory_space<vmem>>, vector<8x1xf32>
      %cst_10 = arith.constant dense<0x7F800000> : vector<8xf32>
      %29 = vector.multi_reduction <minimumf>, %27, %cst_10 [1] : vector<8x16xf32> to vector<8xf32>
      %30 = vector.shape_cast %29 : vector<8xf32> to vector<8x1xf32>
      %31 = arith.minimumf %28, %30 : vector<8x1xf32>
      %c0_11 = arith.constant 0 : index
      %c0_12 = arith.constant 0 : index
      %32 = vector.load %arg6[%c0_11, %c0_12] : memref<8x1xf32, #tpu.memory_space<vmem>>, vector<8x1xf32>
      tpu.vector_store %arg6[%c0_11, %c0_12], %31 {strides = array<i32>} : memref<8x1xf32, #tpu.memory_space<vmem>>, vector<8x1xf32>,
    } else {
    }
    return
  }
  func.func @transform_0(%arg0: i32, %arg1: i32, %arg2: memref<1xi32, #tpu.memory_space<smem>>, %arg3: memref<1xi32, #tpu.memory_space<smem>>) -> (i32, i32) {
    %0 = arith.index_cast %arg0 : i32 to index
    %1 = memref.load %arg2[%0] : memref<1xi32, #tpu.memory_space<smem>>
    %c1_i32 = arith.constant 1 : i32
    %2 = arith.subi %1, %c1_i32 : i32
    %c0_i32 = arith.constant 0 : i32
    %3 = arith.maxsi %2, %c0_i32 : i32
    %4 = arith.minsi %arg1, %3 : i32
    %c0_i32_0 = arith.constant 0 : i32
    return %arg0, %4 : i32, i32
  }
  func.func @transform_1(%arg0: i32, %arg1: i32, %arg2: memref<1xi32, #tpu.memory_space<smem>>, %arg3: memref<1xi32, #tpu.memory_space<smem>>) -> (i32, i32) {
    %c0_i32 = arith.constant 0 : i32
    %c0_i32_0 = arith.constant 0 : i32
    return %arg0, %c0_i32 : i32, i32
  }
  func.func @transform_2(%arg0: i32, %arg1: i32, %arg2: memref<1xi32, #tpu.memory_space<smem>>, %arg3: memref<1xi32, #tpu.memory_space<smem>>) -> (i32, i32) {
    %c0_i32 = arith.constant 0 : i32
    %c0_i32_0 = arith.constant 0 : i32
    return %arg0, %c0_i32 : i32, i32
  }
}

</mosaic_0001>

<bundles_post_ra>
// kernel: tpu_custom_call.1
= control target key start
LH: loop header
LB: loop body
LE: loop exit
PB: predicated region body
PF: predicated region fallthrough
CT: control target
= control target key end

     0   :  { %vm61_vm0 = vcmask 7168   ;;  %v136_v0 = vmov 3.4028235e+38   ;;  %s207_s0 = inlined_call_operand.<no memory space> [shape: s32[1], index: 0, kind: input, shape index: {}]   ;;  %s208_s1 = inlined_call_operand.<no memory space> [shape: s32[1], index: 1, kind: input, shape index: {}]   ;;  %s209_s2 = inlined_call_operand.vmem [shape: f32[8,16], index: 2, kind: input, shape index: {}]   ;;  %s210_s3 = inlined_call_operand.vmem [shape: s32[8,1], index: 3, kind: input, shape index: {}]   ;;  %s211_s4 = inlined_call_operand.vmem [shape: f32[8,1], index: 4, kind: output, shape index: {}]  }
   0x1   :  { %62 = vst.msk [vmem:[%s211_s4] sm:$0xff] %vm61_vm0, %v136_v0  ;;  %p122_p0 = scmp.gt.s32.totalorder %s207_s0, 0  ;;  %p123_p1 = scmp.ge.s32.totalorder %s208_s1, 16 }
   0x3   :  { %p69_p2 = pnand %p123_p1, %p122_p0 }
   0x4   :  { %v74_v1 = vld [vmem:[%s209_s2] sm:$0xff] (!%p69_p2)  ;;  %vm75_vm1 = vcmask (!%p69_p2), 130048  }
   0x5   :  { %72 = sbr.rel (%p69_p2) target bundleno = 151 (0x97), region = 17  ;;  %v76_v2 = vsel (!%p69_p2), %vm75_vm1, %v74_v1, inf }
   0x6   :  { %77 = vmin.xlane.f32.xlu0 (!%p69_p2), %v76_v2 }
   0x8   :  { %v73_v3 = vld [vmem:[%s211_s4] sm:$0xff] (!%p69_p2) }
  0x93   :  { %v78_v4 = vpop.xlane.xlu0 %77 }
  0x94   :  { %v79_v5 = vmin.f32 %v73_v3, %v78_v4 }
  0x96   :  { %81 = vst.msk [vmem:[%s211_s4] sm:$0xff] %vm61_vm0, %v79_v5 }
  0x97 PF:  { %p124_p3 = scmp.lt.s32.totalorder %s208_s1, 16 }
  0x99   :  { %p83_p4 = pnand %p124_p3, %p122_p0 }
  0x9a   :  { %v92_v6 = vld [vmem:[%s210_s3] sm:$0xff] (!%p83_p4)  ;;  %v137_v7 = vmov (!%p83_p4), 0   ;;  %v88_v8 = vlaneseq (!%p83_p4)  ;;  %vm99_vm2 = vcmask (!%p83_p4), 130048  }
  0x9b   :  { %86 = sbr.rel (%p83_p4) target bundleno = 432 (0x1b0), region = 21  ;;  %135 = vset.pattern.permute.xlu0 (!%p83_p4), %v137_v7  ;;  %v87_v10 = vld [vmem:[%s209_s2] sm:$0xff] (!%p83_p4) }
  0x9c   :  { %94 = vperm.xlu0 (!%p83_p4), %135, %v92_v6   ;;  %v89_v9 = vand.u32 (!%p83_p4), 127, %v88_v8 }
  0x9d   :  { %v98_v14 = vld [vmem:[%s211_s4] sm:$0xff] (!%p83_p4) }
 0x11b   :  { %v95_v11 = vpop.permute.xlu0 %94 }
 0x11c   :  { %vm96_vm3 = vcmp.lt.s32.totalorder %v89_v9, %v95_v11 }
 0x11d   :  { %v97_v12 = vsel %vm96_vm3, %v87_v10, 3.4028235e+38 }
 0x11e   :  { %v100_v13 = vsel %vm99_vm2, %v97_v12, inf }
 0x11f   :  { %101 = vmin.xlane.f32.xlu0 %v100_v13 }
 0x1ac   :  { %v102_v15 = vpop.xlane.xlu0 %101 }
 0x1ad   :  { %v103_v16 = vmin.f32 %v98_v14, %v102_v15 }
 0x1af   :  { %105 = vst.msk [vmem:[%s211_s4] sm:$0xff] %vm61_vm0, %v103_v16 }
 0x1b0 PF:  {}

</bundles_post_ra>
